<compile_context>
chip_gen: v6e
topology: v6e:2x2x1
jax: 0.10.0
libtpu: 0.0.40
codegen_flags: <defaults>
</compile_context>

<pallas_src>
import functools

import jax
import jax.numpy as jnp
from jax.experimental import pallas as pl
from jax.experimental.pallas import tpu as pltpu

PACK = 8  # logical rows packed per physical (lane-dense) row


def _round_up(n: int, m: int) -> int:
    return ((n + m - 1) // m) * m


def mlp_kernel(x8_ref, w1_ref, b1_ref, w2_ref, b2_ref, o_ref):
    # x8: (tile_r, PACK*d_in) f32, w1b: (PACK*d_in, PACK*hidden) block-diagonal.
    h = jnp.dot(x8_ref[...], w1_ref[...], preferred_element_type=jnp.float32)
    h = jnp.maximum(h + b1_ref[...], 0.0)                       # bias + ReLU (f32, VPU)
    y = jnp.dot(h, w2_ref[...], preferred_element_type=jnp.float32) + b2_ref[...]
    o_ref[...] = jax.nn.sigmoid(y).astype(o_ref.dtype)          # Sigmoid (f32, EUP)


@functools.partial(jax.jit, static_argnames=("tile_rows_max",))
def mlp_forward(x, w1, b1, w2, b2, *, tile_rows_max=32768):
    """x: (B, D_in); w1: (D_in, 5); b1: (5,)|(1,5); w2: (5, D_out); b2: (D_out,)|(1,D_out)."""
    B, d_in = x.shape
    hidden = w1.shape[1]
    d_out = w2.shape[1]

    x = x.astype(jnp.float32)

    # Pad batch to a multiple of PACK only when needed (rare); the packed
    # reshape below is then a pure metadata (row-major) reshape — no copy.
    b_pad = _round_up(max(B, 1), PACK)
    if b_pad != B:
        x = jnp.pad(x, ((0, b_pad - B), (0, 0)))
    n_rows = b_pad // PACK
    x8 = x.reshape(n_rows, PACK * d_in)

    # 8-way block-diagonal weights / tiled biases (tiny arrays, built per call).
    eye = jnp.eye(PACK, dtype=jnp.float32)
    w1b = jnp.kron(eye, w1.astype(jnp.float32))                     # (PACK*d_in, PACK*hidden)
    b1b = jnp.tile(b1.reshape(1, hidden).astype(jnp.float32), (1, PACK))
    w2b = jnp.kron(eye, w2.astype(jnp.float32))                     # (PACK*hidden, PACK*d_out)
    b2b = jnp.tile(b2.reshape(1, d_out).astype(jnp.float32), (1, PACK))

    # Tile selection (packed rows per grid step).
    tile_r_max = max(8, tile_rows_max // PACK)
    if n_rows <= 256:
        # Small batch: one full-extent block (always a legal block shape).
        tile_r = n_rows
    elif n_rows <= 2 * tile_r_max:
        # Mid batch: at least 2 grid steps so both v7x TensorCores get work.
        tile_r = min(tile_r_max, _round_up((n_rows + 1) // 2, 8))
    else:
        tile_r = tile_r_max
    grid = (pl.cdiv(n_rows, tile_r),)  # boundary block is masked by Pallas

    out8 = pl.pallas_call(
        mlp_kernel,
        out_shape=jax.ShapeDtypeStruct((n_rows, PACK * d_out), jnp.float32),
        grid=grid,
        in_specs=[
            # x: batch-tiled, lane-dense, double-buffered by Pallas.
            pl.BlockSpec((tile_r, PACK * d_in), lambda i: (i, 0)),
            # Weights / biases: constant block index -> VMEM-resident across steps.
            pl.BlockSpec((PACK * d_in, PACK * hidden), lambda i: (0, 0)),
            pl.BlockSpec((1, PACK * hidden), lambda i: (0, 0)),
            pl.BlockSpec((PACK * hidden, PACK * d_out), lambda i: (0, 0)),
            pl.BlockSpec((1, PACK * d_out), lambda i: (0, 0)),
        ],
        out_specs=pl.BlockSpec((tile_r, PACK * d_out), lambda i: (i, 0)),
        compiler_params=pltpu.CompilerParams(
            # Batch steps are independent: shard across TensorCores on v7x.
            dimension_semantics=("parallel",),
            # Explicit budget: ~16 MiB actually used at the default tile; 32 MiB
            # is above v5e's 16 MiB default scoped limit and safe on all parts.
            vmem_limit_bytes=32 * 1024 * 1024,
        ),
    )(x8, w1b, b1b, w2b, b2b)

    out = out8.reshape(b_pad, d_out)  # free (row-major) reshape
    return out[:B]


def _reference(x, w1, b1, w2, b2):
    # Pure f32 reference (matches the PyTorch module's math).
    h = jnp.maximum(x @ w1 + b1.reshape(1, -1), 0.0)
    return jax.nn.sigmoid(h @ w2 + b2.reshape(1, -1))


if __name__ == "__main__":
    # Small shapes consistent with the module's forward.
    batch, input_dim, hidden, output_dim = 8, 16, 5, 4

    key = jax.random.PRNGKey(0)
    kx, k1, kb1, k2, kb2 = jax.random.split(key, 5)

    x = jax.random.normal(kx, (batch, input_dim), dtype=jnp.float32)

    # Deterministic parameter init (PyTorch-style uniform bounds), stored (in, out).
    bound1 = 1.0 / (input_dim ** 0.5)
    w1 = jax.random.uniform(k1, (input_dim, hidden), jnp.float32, -bound1, bound1)
    b1 = jax.random.uniform(kb1, (hidden,), jnp.float32, -bound1, bound1)
    bound2 = 1.0 / (hidden ** 0.5)
    w2 = jax.random.uniform(k2, (hidden, output_dim), jnp.float32, -bound2, bound2)
    b2 = jax.random.uniform(kb2, (output_dim,), jnp.float32, -bound2, bound2)

    # Tolerance note: the MXU may evaluate the (tiny) f32 matmuls with bf16
    # passes depending on generation; 1e-3 on sigmoid outputs covers that while
    # still catching any packing/layout/bias bug (those would be O(0.1)).
    tol = 1e-3

    # 1) Small-batch path (single block, B8 = 1).
    out = mlp_forward(x, w1, b1, w2, b2)
    jax.block_until_ready(out)
    ref = _reference(x, w1, b1, w2, b2)
    assert out.shape == (batch, output_dim)
    assert jnp.allclose(out, ref, atol=tol), "mismatch vs reference (small)"

    # 2) Multi-step grid with a partial boundary block (6000 rows -> 750 packed
    #    rows -> 2 grid steps of 376/374), exercising the masked boundary path
    #    and the 2-TensorCore split on v7x.
    x_big = jax.random.normal(jax.random.PRNGKey(1), (6000, input_dim), jnp.float32)
    out_big = mlp_forward(x_big, w1, b1, w2, b2)
    jax.block_until_ready(out_big)
    ref_big = _reference(x_big, w1, b1, w2, b2)
    assert out_big.shape == (6000, output_dim)
    assert jnp.allclose(out_big, ref_big, atol=tol), "mismatch vs reference (tiled)"

    # 3) Ragged batch (B % 8 != 0): exercises the pad-to-PACK fallback.
    x_odd = jax.random.normal(jax.random.PRNGKey(2), (13, input_dim), jnp.float32)
    out_odd = mlp_forward(x_odd, w1, b1, w2, b2)
    jax.block_until_ready(out_odd)
    ref_odd = _reference(x_odd, w1, b1, w2, b2)
    assert out_odd.shape == (13, output_dim)
    assert jnp.allclose(out_odd, ref_odd, atol=tol), "mismatch vs reference (ragged)"

    print("KERNEL_OK")
</pallas_src>

<mosaic_0001>
module attributes {stable_mosaic.version = 11 : i64} {
  func.func @mlp_kernel(%arg0: i32, %arg1: memref<1x128xf32, #tpu.memory_space<vmem>>, %arg2: memref<128x40xf32, #tpu.memory_space<vmem>>, %arg3: memref<1x40xf32, #tpu.memory_space<vmem>>, %arg4: memref<40x32xf32, #tpu.memory_space<vmem>>, %arg5: memref<1x32xf32, #tpu.memory_space<vmem>>, %arg6: memref<1x32xf32, #tpu.memory_space<vmem>>) attributes {dimension_semantics = [#tpu.dimension_semantics<parallel>], iteration_bounds = array<i64: 1>, scalar_prefetch = 0 : i64, scratch_operands = 0 : i64, tpu.core_type = #tpu.core_type<tc>, window_params = [{transform_indices = @transform_0, window_bounds = array<i64: 1, 128>}, {pipeline_mode = #tpu.pipeline_mode<synchronous>, transform_indices = @transform_1, window_bounds = array<i64: 128, 40>}, {pipeline_mode = #tpu.pipeline_mode<synchronous>, transform_indices = @transform_2, window_bounds = array<i64: 1, 40>}, {pipeline_mode = #tpu.pipeline_mode<synchronous>, transform_indices = @transform_3, window_bounds = array<i64: 40, 32>}, {pipeline_mode = #tpu.pipeline_mode<synchronous>, transform_indices = @transform_4, window_bounds = array<i64: 1, 32>}, {transform_indices = @transform_5, window_bounds = array<i64: 1, 32>}]} {
    %c0 = arith.constant 0 : index
    %c0_0 = arith.constant 0 : index
    %0 = vector.load %arg1[%c0, %c0_0] : memref<1x128xf32, #tpu.memory_space<vmem>>, vector<1x128xf32>
    %c0_1 = arith.constant 0 : index
    %c0_2 = arith.constant 0 : index
    %1 = vector.load %arg2[%c0_1, %c0_2] : memref<128x40xf32, #tpu.memory_space<vmem>>, vector<128x40xf32>
    %cst = arith.constant dense<0.000000e+00> : vector<1x40xf32>
    %2 = tpu.matmul %0, %1, %cst {dimension_numbers = #tpu.dot_dimension_numbers<[1], [0], [0], [1], [0, 0, 1, 1], [], []>} : vector<1x128xf32>, vector<128x40xf32>, vector<1x40xf32> -> vector<1x40xf32>
    %c0_3 = arith.constant 0 : index
    %c0_4 = arith.constant 0 : index
    %3 = vector.load %arg3[%c0_3, %c0_4] : memref<1x40xf32, #tpu.memory_space<vmem>>, vector<1x40xf32>
    %4 = arith.addf %2, %3 : vector<1x40xf32>
    %cst_5 = arith.constant 0.000000e+00 : f32
    %5 = vector.broadcast %cst_5 : f32 to vector<1x40xf32>
    %6 = arith.maximumf %4, %5 : vector<1x40xf32>
    %c0_6 = arith.constant 0 : index
    %c0_7 = arith.constant 0 : index
    %7 = vector.load %arg4[%c0_6, %c0_7] : memref<40x32xf32, #tpu.memory_space<vmem>>, vector<40x32xf32>
    %cst_8 = arith.constant dense<0.000000e+00> : vector<1x32xf32>
    %8 = tpu.matmul %6, %7, %cst_8 {dimension_numbers = #tpu.dot_dimension_numbers<[1], [0], [0], [1], [0, 0, 1, 1], [], []>} : vector<1x40xf32>, vector<40x32xf32>, vector<1x32xf32> -> vector<1x32xf32>
    %c0_9 = arith.constant 0 : index
    %c0_10 = arith.constant 0 : index
    %9 = vector.load %arg5[%c0_9, %c0_10] : memref<1x32xf32, #tpu.memory_space<vmem>>, vector<1x32xf32>
    %10 = arith.addf %8, %9 : vector<1x32xf32>
    %11 = arith.negf %10 : vector<1x32xf32>
    %12 = math.exp %11 : vector<1x32xf32>
    %cst_11 = arith.constant 1.000000e+00 : f32
    %13 = vector.broadcast %cst_11 : f32 to vector<1x32xf32>
    %14 = arith.addf %13, %12 : vector<1x32xf32>
    %15 = arith.divf %13, %14 : vector<1x32xf32>
    %c0_12 = arith.constant 0 : index
    %c0_13 = arith.constant 0 : index
    %16 = vector.load %arg6[%c0_12, %c0_13] : memref<1x32xf32, #tpu.memory_space<vmem>>, vector<1x32xf32>
    tpu.vector_store %arg6[%c0_12, %c0_13], %15 {strides = array<i32>} : memref<1x32xf32, #tpu.memory_space<vmem>>, vector<1x32xf32>,
    return
  }
  func.func @transform_0(%arg0: i32) -> (i32, i32) {
    %c0_i32 = arith.constant 0 : i32
    %c0_i32_0 = arith.constant 0 : i32
    return %arg0, %c0_i32 : i32, i32
  }
  func.func @transform_1(%arg0: i32) -> (i32, i32) {
    %c0_i32 = arith.constant 0 : i32
    %c0_i32_0 = arith.constant 0 : i32
    %c0_i32_1 = arith.constant 0 : i32
    return %c0_i32, %c0_i32_0 : i32, i32
  }
  func.func @transform_2(%arg0: i32) -> (i32, i32) {
    %c0_i32 = arith.constant 0 : i32
    %c0_i32_0 = arith.constant 0 : i32
    %c0_i32_1 = arith.constant 0 : i32
    return %c0_i32, %c0_i32_0 : i32, i32
  }
  func.func @transform_3(%arg0: i32) -> (i32, i32) {
    %c0_i32 = arith.constant 0 : i32
    %c0_i32_0 = arith.constant 0 : i32
    %c0_i32_1 = arith.constant 0 : i32
    return %c0_i32, %c0_i32_0 : i32, i32
  }
  func.func @transform_4(%arg0: i32) -> (i32, i32) {
    %c0_i32 = arith.constant 0 : i32
    %c0_i32_0 = arith.constant 0 : i32
    %c0_i32_1 = arith.constant 0 : i32
    return %c0_i32, %c0_i32_0 : i32, i32
  }
  func.func @transform_5(%arg0: i32) -> (i32, i32) {
    %c0_i32 = arith.constant 0 : i32
    %c0_i32_0 = arith.constant 0 : i32
    return %arg0, %c0_i32 : i32, i32
  }
}

</mosaic_0001>

<bundles_post_ra>
// kernel: mlp_forward.1
= control target key start
LH: loop header
LB: loop body
LE: loop exit
PB: predicated region body
PF: predicated region fallthrough
CT: control target
= control target key end

     0   :  { %v280_v0 = vmov 0.0   ;;  %vm281_vm0 = vmmov 0   ;;  %vm115_vm1 = vcmask 326656   ;;  %vm195_vm2 = vcmask 253952   ;;  %s410_s1 = inlined_call_operand.vmem [shape: f32[128,40], index: 1, kind: input, shape index: {}]   ;;  %s411_s3 = inlined_call_operand.vmem [shape: f32[40,32], index: 3, kind: input, shape index: {}]   ;;  %s412_s0 = inlined_call_operand.vmem [shape: f32[1,128], index: 0, kind: input, shape index: {}]   ;;  %s413_s2 = inlined_call_operand.vmem [shape: f32[1,40], index: 2, kind: input, shape index: {}]   ;;  %s414_s4 = inlined_call_operand.vmem [shape: f32[1,32], index: 4, kind: input, shape index: {}]   ;;  %s415_s5 = inlined_call_operand.vmem [shape: f32[1,32], index: 5, kind: output, shape index: {}]  }
   0x1   :  { %226 = vmatprep.subr.mxu0 %v280_v0  ;;  %v36_v1 = vld [vmem:[%s410_s1 + $0x78] sm:$0xff]  ;;  %v35_v2 = vld [vmem:[%s410_s1 + $0x70] sm:$0xff]  ;;  %258 = vmatprep.mubr.msk.f32.mxu0 %vm281_vm0, %v280_v0  ;;  %v34_v3 = vld [vmem:[%s410_s1 + $0x68] sm:$0xff] }
   0x2   :  { %227 = vmatpush3.msra.mxu0 %v36_v1  ;;  %261 = vmatprep.subr.mxu1 %v280_v0  ;;  %v33_v4 = vld [vmem:[%s410_s1 + $0x60] sm:$0xff]  ;;  %v32_v6 = vld [vmem:[%s410_s1 + $0x58] sm:$0xff]  ;;  %v31_v8 = vld [vmem:[%s410_s1 + $0x50] sm:$0xff] }
   0x3   :  { %228 = vmatprep.subr.mxu0 %v280_v0  ;;  %271 = vmatprep.mubr.msk.f32.mxu1 %vm281_vm0, %v280_v0  ;;  %v113_v5 = vld [vmem:[%s411_s3 + $0x20] sm:$0xff]  ;;  %v112_v7 = vld [vmem:[%s411_s3 + $0x18] sm:$0xff]  ;;  %v30_v9 = vld [vmem:[%s410_s1 + $0x48] sm:$0xff] }
   0x4   :  { %229 = vmatpush3.msra.mxu0 %v35_v2  ;;  %262 = vmatpush3.msra.mxu1 %v113_v5  ;;  %v29_v10 = vld [vmem:[%s410_s1 + $0x40] sm:$0xff]  ;;  %v28_v11 = vld [vmem:[%s410_s1 + $0x38] sm:$0xff]  ;;  %v27_v12 = vld [vmem:[%s410_s1 + $0x30] sm:$0xff] }
   0x5   :  { %230 = vmatprep.subr.mxu0 %v280_v0  ;;  %263 = vmatprep.subr.mxu1 %v280_v0  ;;  %v26_v13 = vld [vmem:[%s410_s1 + $0x28] sm:$0xff]  ;;  %v25_v14 = vld [vmem:[%s410_s1 + $0x20] sm:$0xff]  ;;  %v24_v15 = vld [vmem:[%s410_s1 + $0x18] sm:$0xff] }
   0x6   :  { %231 = vmatpush3.msra.mxu0 %v34_v3  ;;  %264 = vmatpush3.msra.mxu1 %v112_v7  ;;  %v23_v16 = vld [vmem:[%s410_s1 + $0x10] sm:$0xff]  ;;  %v22_v17 = vld [vmem:[%s410_s1 + $0x8] sm:$0xff]  ;;  %v21_v18 = vld [vmem:[%s410_s1] sm:$0xff] }
   0x7   :  { %232 = vmatprep.subr.mxu0 %v280_v0  ;;  %265 = vmatprep.subr.mxu1 %v280_v0  ;;  %v20_v19 = vld [vmem:[%s412_s0] sm:$0x1]  ;;  %v111_v20 = vld [vmem:[%s411_s3 + $0x10] sm:$0xff]  ;;  %v110_v21 = vld [vmem:[%s411_s3 + $0x8] sm:$0xff] }
   0x8   :  { %233 = vmatpush3.msra.mxu0 %v33_v4  ;;  %266 = vmatpush3.msra.mxu1 %v111_v20  ;;  %v109_v22 = vld [vmem:[%s411_s3] sm:$0xff] }
   0x9   :  { %234 = vmatprep.subr.mxu0 %v280_v0  ;;  %267 = vmatprep.subr.mxu1 %v280_v0  ;;  %v37_v23 = vld [vmem:[%s413_s2] sm:$0x1] }
   0xa   :  { %235 = vmatpush3.msra.mxu0 %v32_v6  ;;  %268 = vmatpush3.msra.mxu1 %v110_v21  ;;  %v114_v28 = vld [vmem:[%s414_s4] sm:$0x1] }
   0xb   :  { %236 = vmatprep.subr.mxu0 %v280_v0  ;;  %269 = vmatprep.subr.mxu1 %v280_v0 }
   0xc   :  { %237 = vmatpush3.msra.mxu0 %v31_v8  ;;  %270 = vmatpush3.msra.mxu1 %v109_v22 }
   0xd   :  { %238 = vmatprep.subr.mxu0 %v280_v0 }
   0xe   :  { %239 = vmatpush3.msra.mxu0 %v30_v9 }
   0xf   :  { %240 = vmatprep.subr.mxu0 %v280_v0 }
  0x10   :  { %241 = vmatpush3.msra.mxu0 %v29_v10 }
  0x11   :  { %242 = vmatprep.subr.mxu0 %v280_v0 }
  0x12   :  { %243 = vmatpush3.msra.mxu0 %v28_v11 }
  0x13   :  { %244 = vmatprep.subr.mxu0 %v280_v0 }
  0x14   :  { %245 = vmatpush3.msra.mxu0 %v27_v12 }
  0x15   :  { %246 = vmatprep.subr.mxu0 %v280_v0 }
  0x16   :  { %247 = vmatpush3.msra.mxu0 %v26_v13 }
  0x17   :  { %248 = vmatprep.subr.mxu0 %v280_v0 }
  0x18   :  { %249 = vmatpush3.msra.mxu0 %v25_v14 }
  0x19   :  { %250 = vmatprep.subr.mxu0 %v280_v0 }
  0x1a   :  { %251 = vmatpush3.msra.mxu0 %v24_v15 }
  0x1b   :  { %252 = vmatprep.subr.mxu0 %v280_v0 }
  0x1c   :  { %253 = vmatpush3.msra.mxu0 %v23_v16 }
  0x1d   :  { %254 = vmatprep.subr.mxu0 %v280_v0 }
  0x1e   :  { %255 = vmatpush3.msra.mxu0 %v22_v17 }
  0x1f   :  { %256 = vmatprep.subr.mxu0 %v280_v0 }
  0x20   :  { %257 = vmatpush3.msra.mxu0 %v21_v18 }
  0x21   :  { %259 = vmatmul.mubr.f32.vlgmr.msra.gmra.mxu0 %v20_v19 }
  0xe1   :  { %v104_v24 = vpop.f32.mrf.mxu0 }
  0xe2   :  { %v105_v25 = vadd.f32 %v104_v24, %v37_v23 }
  0xe3   :  { %v260_v26 = vpop.f32.mrf.mxu0 }
  0xe4   :  { %v108_v27 = vmax.f32 %v105_v25, 0.0 }
  0xe6   :  { %272 = vmatmul.mubr.msk.f32.vlgmr.msra.gmra.mxu1 %vm115_vm1, %v108_v27 }
 0x1a6   :  { %v185_v29 = vpop.f32.mrf.mxu1 }
 0x1a7   :  { %v186_v30 = vadd.f32 %v185_v29, %v114_v28 }
 0x1a8   :  { %v273_v31 = vpop.f32.mrf.mxu1 }
 0x1a9   :  { %v202_v32 = vmul.f32 -1.442695, %v186_v30 }
 0x1ab   :  { %276 = vpow2.f32 %v202_v32 }
 0x1b8   :  { %v277_v33 = vpop.eup %276 }
 0x1b9   :  { %v192_v34 = vadd.f32 1.0, %v277_v33 }
 0x1bb   :  { %278 = vrcp.f32 %v192_v34 }
 0x1c8   :  { %v279_v35 = vpop.eup %278 }
 0x1c9   :  { %196 = vst.msk [vmem:[%s415_s5] sm:$0x1] %vm195_vm2, %v279_v35 }

</bundles_post_ra>
